<compile_context>
chip_gen: v5e
topology: v5e:2x2
jax: 0.10.0
libtpu: 0.0.40
codegen_flags: <defaults>
</compile_context>

<pallas_src>
import functools

import jax
import jax.numpy as jnp
from jax import lax
from jax.experimental import pallas as pl
from jax.experimental.pallas import tpu as pltpu


def feed_forward_hidden_dim(dim: int, hidden_dim: int, multiple_of: int,
                            ffn_dim_multiplier=None) -> int:
    """Replicates the hidden-dim rounding in the PyTorch FeedForward.__init__."""
    hidden_dim = int(2 * hidden_dim / 3)
    if ffn_dim_multiplier is not None:
        hidden_dim = int(ffn_dim_multiplier * hidden_dim)
    hidden_dim = multiple_of * ((hidden_dim + multiple_of - 1) // multiple_of)
    return hidden_dim


def prepare_ffn_weights(w1, w2, w3):
    """One-time weight prep (call at load time, OUTSIDE the per-step path).

    Transposes w2 from PyTorch (dim, hidden) to (hidden, dim) so the kernel can
    DMA contiguous row slabs and run an NN matmul for the second projection.
    """
    hidden, dim = w1.shape
    assert w3.shape == (hidden, dim)
    assert w2.shape == (dim, hidden)
    w2t = jnp.asarray(jnp.transpose(w2))          # materialized once, (hidden, dim)
    return w1, w2t, w3


# ----------------------------------------------------------------------------- kernel

def _swiglu_ffn_kernel(x_ref, w1_ref, w3_ref, w2t_ref, o_ref, acc_ref):
    # x_ref:   (tm, dim)   resident across the hidden axis
    # w1_ref:  (th, dim)   PyTorch (out, in) layout tile
    # w3_ref:  (th, dim)
    # w2t_ref: (th, dim)   pre-transposed w2 tile (contiguous row slab)
    # o_ref:   (tm, dim)   resident across the hidden axis (accumulator output)
    # acc_ref: (tm, dim)   f32 VMEM scratch
    h = pl.program_id(1)

    @pl.when(h == 0)
    def _():
        acc_ref[...] = jnp.zeros_like(acc_ref)

    x = x_ref[...]
    # Contract the shared feature axis (axis 1 of both operands): x @ w.T on the
    # MXU, no transposed weight copies needed.
    dn_nt = (((1,), (1,)), ((), ()))
    h1 = lax.dot_general(x, w1_ref[...], dn_nt, preferred_element_type=jnp.float32)
    h3 = lax.dot_general(x, w3_ref[...], dn_nt, preferred_element_type=jnp.float32)
    # SiLU(h1) * h3 in f32 (EUP sigmoid + VPU muls hide under MXU cycles).
    gated = (h1 * jax.nn.sigmoid(h1)) * h3                     # (tm, th) f32
    # Partial second projection for this hidden tile: NN matmul against the
    # pre-transposed w2 slab, accumulated in f32.
    acc_ref[...] += jnp.dot(gated.astype(x.dtype), w2t_ref[...],
                            preferred_element_type=jnp.float32)

    @pl.when(h == pl.num_programs(1) - 1)
    def _():
        o_ref[...] = acc_ref[...].astype(o_ref.dtype)


# ----------------------------------------------------------------------------- helpers

def _round_up(x: int, m: int) -> int:
    return ((x + m - 1) // m) * m


def _pick_hidden_tile(hidden: int, target: int = 1024) -> int:
    """Largest tile <= target that divides `hidden`, preferring 256-multiples
    (v6e/v7x MXU width), then 128-multiples; otherwise the full extent."""
    for align in (256, 128):
        if hidden % align != 0:
            continue
        t = min((target // align) * align, (hidden // align) * align)
        while t >= align:
            if hidden % t == 0:
                return t
            t -= align
    return hidden


@functools.lru_cache(maxsize=1)
def _hw_params():
    """Returns (vmem_capacity_bytes, num_tensorcores, is_v5e). Defensive: falls
    back to conservative values if the query is unavailable."""
    kind = ""
    try:
        kind = jax.devices()[0].device_kind.lower()
    except Exception:
        pass
    vmem_cap = None
    try:
        vmem_cap = int(pltpu.get_tpu_info().vmem_capacity_bytes)
    except Exception:
        vmem_cap = None
    if vmem_cap is None or vmem_cap <= 0:
        vmem_cap = (64 if "v7" in kind else 128) * 1024 * 1024
    is_v5e = ("v5 lite" in kind) or ("v5e" in kind) or ("v5lite" in kind)
    # v7x: 2 TensorCores per chip share the "parallel" grid axis.
    num_cores = 2 if ("v7" in kind or vmem_cap <= 80 * 1024 * 1024) else 1
    return vmem_cap, num_cores, is_v5e


# ----------------------------------------------------------------------------- wrapper

@functools.partial(jax.jit, static_argnames=("tm", "th"))
def feed_forward(x, w1, w2t, w3, *, tm=None, th=None):
    """SwiGLU FFN: w2(silu(w1(x)) * w3(x)).

    x:   (batch, seq, dim)
    w1:  (hidden, dim), w3: (hidden, dim)   (PyTorch Linear layout)
    w2t: (hidden, dim)                      (w2 transposed ONCE via prepare_ffn_weights)
    Pass bf16 activations/weights for bf16 MXU matmuls (f32 accumulation inside).
    """
    batch, seq, dim = x.shape
    hidden = w1.shape[0]
    assert w1.shape == (hidden, dim) and w3.shape == (hidden, dim)
    assert w2t.shape == (hidden, dim), "pass w2 transposed to (hidden, dim); see prepare_ffn_weights"

    M = batch * seq
    itemsize = jnp.dtype(x.dtype).itemsize
    sub = max(8, 32 // itemsize)          # sublane pack: 8 f32 / 16 bf16 / 32 int8

    vmem_cap, num_cores, is_v5e = _hw_params()
    budget = int(vmem_cap * 0.82)         # ~105 MiB on 128 MiB chips, ~52 MiB on v7x

    # ---------------- hidden tile -------------------------------------------------
    if th is None:
        th = _pick_hidden_tile(hidden, target=1024)
    else:
        if hidden % th != 0:
            raise ValueError(f"th={th} must divide hidden={hidden}")
        if th != hidden and th % 8 != 0:
            raise ValueError(f"th={th} must be a multiple of 8 (or equal hidden)")

    # ---------------- row tile (the arithmetic-intensity knob) --------------------
    if tm is None:
        tm_target = 512 if is_v5e else 1024     # v6e/v7x need >= ~650 rows/weight-pass
        if M >= tm_target:
            tm = tm_target
        else:
            tm = _round_up(M, sub)
            if (not is_v5e) and tm >= 256:
                tm_256 = _round_up(tm, 256)     # MXU-friendly, only if padding is cheap
                if tm_256 - M <= max(M // 8, sub):
                    tm = tm_256
    tm = max(sub, _round_up(tm, sub))

    # v7x: keep both TensorCores busy — the "parallel" M axis needs >= 2 row tiles.
    if num_cores >= 2 and _round_up(M, tm) // tm < num_cores and tm > sub:
        tm = max(sub, _round_up((M + num_cores - 1) // num_cores, sub))

    # ---------------- VMEM budget (incl. f32 intermediates) -----------------------
    def vmem_bytes(tm_, th_):
        x_blk = tm_ * dim * itemsize
        w_blk = 3 * th_ * dim * itemsize
        o_blk = tm_ * dim * itemsize
        acc = tm_ * dim * 4
        interm = 4 * tm_ * th_ * 4          # h1, h3, gated (f32) + cast temp
        return 2 * (x_blk + w_blk + o_blk) + acc + interm   # x2: double buffering

    # Shrink th FIRST (preserves tm = flops per streamed weight byte), tm last.
    while (vmem_bytes(tm, th) > budget and th > 128
           and hidden % (th // 2) == 0 and (th // 2) % 128 == 0):
        th //= 2
    while vmem_bytes(tm, th) > budget and tm > sub:
        tm = max(sub, _round_up(tm // 2, sub))

    assert hidden % th == 0, "internal error: th must divide hidden"

    # ---------------- ragged-M handling: zero-pad rows, slice back ----------------
    M_pad = _round_up(M, tm)
    x2d = x.reshape(M, dim)
    if M_pad != M:
        x2d = jnp.pad(x2d, ((0, M_pad - M), (0, 0)))

    grid = (M_pad // tm, hidden // th)
    n_row_tiles = grid[0]

    cost = pl.CostEstimate(
        flops=int(6 * M_pad * dim * hidden),              # three (M,dim,hidden) matmuls
        transcendentals=int(M_pad * hidden),              # sigmoid
        bytes_accessed=int((x2d.size + M_pad * dim) * itemsize
                           + n_row_tiles * (w1.size + w2t.size + w3.size) * itemsize),
    )

    vmem_limit = int(min(max(vmem_bytes(tm, th) * 9 // 8, 32 * 1024 * 1024),
                         vmem_cap - 6 * 1024 * 1024))

    out2d = pl.pallas_call(
        _swiglu_ffn_kernel,
        out_shape=jax.ShapeDtypeStruct((M_pad, dim), x.dtype),
        grid_spec=pltpu.PrefetchScalarGridSpec(
            num_scalar_prefetch=0,
            grid=grid,
            in_specs=[
                pl.BlockSpec((tm, dim), lambda i, h: (i, 0)),   # x rows (resident over h)
                pl.BlockSpec((th, dim), lambda i, h: (h, 0)),   # w1 hidden row-slab
                pl.BlockSpec((th, dim), lambda i, h: (h, 0)),   # w3 hidden row-slab
                pl.BlockSpec((th, dim), lambda i, h: (h, 0)),   # w2^T hidden row-slab (contiguous)
            ],
            out_specs=pl.BlockSpec((tm, dim), lambda i, h: (i, 0)),
            scratch_shapes=[pltpu.VMEM((tm, dim), jnp.float32)],
        ),
        compiler_params=pltpu.CompilerParams(
            dimension_semantics=("parallel", "arbitrary"),
            vmem_limit_bytes=vmem_limit,
        ),
        cost_estimate=cost,
    )(x2d, w1, w3, w2t)

    if M_pad != M:
        out2d = out2d[:M]
    return out2d.reshape(batch, seq, dim)


# ----------------------------------------------------------------------------- reference / test

def _reference(x, w1, w2, w3):
    h1 = jnp.einsum("bsd,hd->bsh", x, w1)
    h3 = jnp.einsum("bsd,hd->bsh", x, w3)
    g = jax.nn.silu(h1) * h3
    return jnp.einsum("bsh,dh->bsd", g, w2)


if __name__ == "__main__":
    # Module config (small, TPU-tile friendly): dim=128, hidden_dim=256,
    # multiple_of=128, ffn_dim_multiplier=None -> effective hidden = 256.
    dim = 128
    hidden = feed_forward_hidden_dim(dim, hidden_dim=256, multiple_of=128,
                                     ffn_dim_multiplier=None)  # -> 256
    batch, seq = 2, 8

    key = jax.random.PRNGKey(0)
    kx, k1, k2, k3 = jax.random.split(key, 4)
    x = jax.random.normal(kx, (batch, seq, dim), dtype=jnp.float32)
    # PyTorch Linear weight layout: (out_features, in_features).
    w1 = jax.random.normal(k1, (hidden, dim), dtype=jnp.float32) * (1.0 / dim ** 0.5)
    w3 = jax.random.normal(k3, (hidden, dim), dtype=jnp.float32) * (1.0 / dim ** 0.5)
    w2 = jax.random.normal(k2, (dim, hidden), dtype=jnp.float32) * (1.0 / hidden ** 0.5)

    # One-time weight prep (w2 transposed outside the per-call path).
    w1p, w2t, w3p = prepare_ffn_weights(w1, w2, w3)

    # 1) f32 path, exact check.
    out = jax.block_until_ready(feed_forward(x, w1p, w2t, w3p))
    ref = _reference(x, w1, w2, w3)
    assert out.shape == (batch, seq, dim)
    assert jnp.allclose(out, ref, atol=1e-4, rtol=1e-4), "f32 mismatch vs reference"

    # 2) bf16 path (bf16 MXU matmuls, f32 accumulation), relative-error check.
    xb = x.astype(jnp.bfloat16)
    w1b, w2tb, w3b = (a.astype(jnp.bfloat16) for a in (w1p, w2t, w3p))
    out_bf16 = jax.block_until_ready(feed_forward(xb, w1b, w2tb, w3b)).astype(jnp.float32)
    ref_bf16 = _reference(xb.astype(jnp.float32), w1b.astype(jnp.float32),
                          jnp.transpose(w2tb).astype(jnp.float32), w3b.astype(jnp.float32))
    rel = jnp.linalg.norm(out_bf16 - ref_bf16) / jnp.linalg.norm(ref_bf16)
    assert float(rel) < 0.05, f"bf16 relative error too large: {float(rel)}"

    # 3) Ragged M (2*7=14 rows -> padded to a sublane multiple) with forced hidden
    #    tiling (th=128 -> 2 accumulation steps over the 'arbitrary' axis).
    x_rag = jax.random.normal(kx, (2, 7, dim), dtype=jnp.float32)
    out_rag = jax.block_until_ready(feed_forward(x_rag, w1p, w2t, w3p, th=128))
    ref_rag = _reference(x_rag, w1, w2, w3)
    assert out_rag.shape == (2, 7, dim)
    assert jnp.allclose(out_rag, ref_rag, atol=1e-4, rtol=1e-4), "ragged/tiled mismatch"

    print("KERNEL_OK")
</pallas_src>

<mosaic_0001>
module attributes {stable_mosaic.version = 11 : i64} {
  func.func @_swiglu_ffn_kernel(%arg0: i32, %arg1: i32, %arg2: memref<16x128xf32, #tpu.memory_space<vmem>>, %arg3: memref<256x128xf32, #tpu.memory_space<vmem>>, %arg4: memref<256x128xf32, #tpu.memory_space<vmem>>, %arg5: memref<256x128xf32, #tpu.memory_space<vmem>>, %arg6: memref<16x128xf32, #tpu.memory_space<vmem>>, %arg7: memref<16x128xf32, #tpu.memory_space<vmem>>) attributes {dimension_semantics = [#tpu.dimension_semantics<parallel>, #tpu.dimension_semantics<arbitrary>], iteration_bounds = array<i64: 1, 1>, scalar_prefetch = 0 : i64, scratch_operands = 1 : i64, tpu.core_type = #tpu.core_type<tc>, window_params = [{transform_indices = @transform_0, window_bounds = array<i64: 16, 128>}, {transform_indices = @transform_1, window_bounds = array<i64: 256, 128>}, {transform_indices = @transform_2, window_bounds = array<i64: 256, 128>}, {transform_indices = @transform_3, window_bounds = array<i64: 256, 128>}, {transform_indices = @transform_4, window_bounds = array<i64: 16, 128>}]} {
    %c0_i32 = arith.constant 0 : i32
    %0 = arith.cmpi eq, %arg1, %c0_i32 : i32
    %1 = arith.extui %0 : i1 to i32
    %c0_i32_0 = arith.constant 0 : i32
    %2 = arith.cmpi ne, %1, %c0_i32_0 : i32
    scf.if %2 {
      %cst_17 = arith.constant 0.000000e+00 : f32
      %23 = vector.broadcast %cst_17 : f32 to vector<16x128xf32>
      %c0_18 = arith.constant 0 : index
      %c0_19 = arith.constant 0 : index
      %24 = vector.load %arg7[%c0_18, %c0_19] : memref<16x128xf32, #tpu.memory_space<vmem>>, vector<16x128xf32>
      tpu.vector_store %arg7[%c0_18, %c0_19], %23 {strides = array<i32>} : memref<16x128xf32, #tpu.memory_space<vmem>>, vector<16x128xf32>,
    } else {
    }
    %c0 = arith.constant 0 : index
    %c0_1 = arith.constant 0 : index
    %3 = vector.load %arg2[%c0, %c0_1] : memref<16x128xf32, #tpu.memory_space<vmem>>, vector<16x128xf32>
    %c0_2 = arith.constant 0 : index
    %c0_3 = arith.constant 0 : index
    %4 = vector.load %arg3[%c0_2, %c0_3] : memref<256x128xf32, #tpu.memory_space<vmem>>, vector<256x128xf32>
    %cst = arith.constant dense<0.000000e+00> : vector<16x256xf32>
    %5 = tpu.matmul %3, %4, %cst {dimension_numbers = #tpu.dot_dimension_numbers<[1], [1], [0], [0], [0, 0, 1, 0], [], []>} : vector<16x128xf32>, vector<256x128xf32>, vector<16x256xf32> -> vector<16x256xf32>
    %c0_4 = arith.constant 0 : index
    %c0_5 = arith.constant 0 : index
    %6 = vector.load %arg4[%c0_4, %c0_5] : memref<256x128xf32, #tpu.memory_space<vmem>>, vector<256x128xf32>
    %cst_6 = arith.constant dense<0.000000e+00> : vector<16x256xf32>
    %7 = tpu.matmul %3, %6, %cst_6 {dimension_numbers = #tpu.dot_dimension_numbers<[1], [1], [0], [0], [0, 0, 1, 0], [], []>} : vector<16x128xf32>, vector<256x128xf32>, vector<16x256xf32> -> vector<16x256xf32>
    %8 = arith.negf %5 : vector<16x256xf32>
    %9 = math.exp %8 : vector<16x256xf32>
    %cst_7 = arith.constant 1.000000e+00 : f32
    %10 = vector.broadcast %cst_7 : f32 to vector<16x256xf32>
    %11 = arith.addf %10, %9 : vector<16x256xf32>
    %12 = arith.divf %10, %11 : vector<16x256xf32>
    %13 = arith.mulf %5, %12 : vector<16x256xf32>
    %14 = arith.mulf %13, %7 : vector<16x256xf32>
    %c0_8 = arith.constant 0 : index
    %c0_9 = arith.constant 0 : index
    %15 = vector.load %arg7[%c0_8, %c0_9] : memref<16x128xf32, #tpu.memory_space<vmem>>, vector<16x128xf32>
    %c0_10 = arith.constant 0 : index
    %c0_11 = arith.constant 0 : index
    %16 = vector.load %arg5[%c0_10, %c0_11] : memref<256x128xf32, #tpu.memory_space<vmem>>, vector<256x128xf32>
    %cst_12 = arith.constant dense<0.000000e+00> : vector<16x128xf32>
    %17 = tpu.matmul %14, %16, %cst_12 {dimension_numbers = #tpu.dot_dimension_numbers<[1], [0], [0], [1], [0, 0, 1, 1], [], []>} : vector<16x256xf32>, vector<256x128xf32>, vector<16x128xf32> -> vector<16x128xf32>
    %18 = arith.addf %15, %17 : vector<16x128xf32>
    %c0_13 = arith.constant 0 : index
    %c0_14 = arith.constant 0 : index
    %19 = vector.load %arg7[%c0_13, %c0_14] : memref<16x128xf32, #tpu.memory_space<vmem>>, vector<16x128xf32>
    tpu.vector_store %arg7[%c0_13, %c0_14], %18 {strides = array<i32>} : memref<16x128xf32, #tpu.memory_space<vmem>>, vector<16x128xf32>,
    %c0_i32_15 = arith.constant 0 : i32
    %20 = arith.cmpi eq, %arg1, %c0_i32_15 : i32
    %21 = arith.extui %20 : i1 to i32
    %c0_i32_16 = arith.constant 0 : i32
    %22 = arith.cmpi ne, %21, %c0_i32_16 : i32
    scf.if %22 {
      %c0_17 = arith.constant 0 : index
      %c0_18 = arith.constant 0 : index
      %23 = vector.load %arg7[%c0_17, %c0_18] : memref<16x128xf32, #tpu.memory_space<vmem>>, vector<16x128xf32>
      %c0_19 = arith.constant 0 : index
      %c0_20 = arith.constant 0 : index
      %24 = vector.load %arg6[%c0_19, %c0_20] : memref<16x128xf32, #tpu.memory_space<vmem>>, vector<16x128xf32>
      tpu.vector_store %arg6[%c0_19, %c0_20], %23 {strides = array<i32>} : memref<16x128xf32, #tpu.memory_space<vmem>>, vector<16x128xf32>,
    } else {
    }
    return
  }
  func.func @transform_0(%arg0: i32, %arg1: i32) -> (i32, i32) {
    %c0_i32 = arith.constant 0 : i32
    %c0_i32_0 = arith.constant 0 : i32
    return %arg0, %c0_i32 : i32, i32
  }
  func.func @transform_1(%arg0: i32, %arg1: i32) -> (i32, i32) {
    %c0_i32 = arith.constant 0 : i32
    %c0_i32_0 = arith.constant 0 : i32
    return %arg1, %c0_i32 : i32, i32
  }
  func.func @transform_2(%arg0: i32, %arg1: i32) -> (i32, i32) {
    %c0_i32 = arith.constant 0 : i32
    %c0_i32_0 = arith.constant 0 : i32
    return %arg1, %c0_i32 : i32, i32
  }
  func.func @transform_3(%arg0: i32, %arg1: i32) -> (i32, i32) {
    %c0_i32 = arith.constant 0 : i32
    %c0_i32_0 = arith.constant 0 : i32
    return %arg1, %c0_i32 : i32, i32
  }
  func.func @transform_4(%arg0: i32, %arg1: i32) -> (i32, i32) {
    %c0_i32 = arith.constant 0 : i32
    %c0_i32_0 = arith.constant 0 : i32
    return %arg0, %c0_i32 : i32, i32
  }
}

</mosaic_0001>

<bundles_post_ra>
// kernel: feed_forward.1
= control target key start
LH: loop header
LB: loop body
LE: loop exit
PB: predicated region body
PF: predicated region fallthrough
CT: control target
= control target key end

     0   :  { %9 = vsyncpa [#allocation4], 0  ;;  %s706_s0 = inlined_call_operand.hbm [shape: f32[16,128], index: 0, kind: input, shape index: {}]   ;;  %s707_s1 = inlined_call_operand.hbm [shape: f32[256,128], index: 1, kind: input, shape index: {}]   ;;  %s708_s2 = inlined_call_operand.hbm [shape: f32[256,128], index: 2, kind: input, shape index: {}]   ;;  %s709_s3 = inlined_call_operand.hbm [shape: f32[256,128], index: 3, kind: input, shape index: {}]   ;;  %s710_s4 = inlined_call_operand.hbm [shape: f32[16,128], index: 4, kind: output, shape index: {}]  }
   0x1   :  { %10 = vsyncpa [#allocation7], 0 }
   0x2   :  { %11 = vsyncpa [#allocation10], 0 }
   0x3   :  { %12 = vsyncpa [#allocation5], 0  ;;  %s30_s17 = sshll.u32 %s707_s1, 4  ;;  %s628_s18 = smov [#allocation6]   ;;  %s31_s17 = int_to_ptr.hbm [resolvable:$true] %s30_s17 }
   0x4   :  { %s32_s19 = sshll.u32 %s628_s18, 4  ;;  %s17_s22 = sshll.u32 %s706_s0, 4  ;;  %s33_s19 = int_to_ptr.vmem [resolvable:$true] %s32_s19  ;;  %s18_s22 = int_to_ptr.hbm [resolvable:$true] %s17_s22 }
   0x5   :  { %s629_s23 = smov 128   ;;  %s630_s24 = smov 8  }
   0x6   :  { %38 = dma.hbm_to_vmem [thread:$0]  %s31_s17, 4096, %s33_s19, [#allocation7], %s629_s23, %s629_s23, %s630_s24  }
   0x7   :  { %s631_s25 = smov [#allocation3]   ;;  %s43_s1 = sshll.u32 %s708_s2, 4  ;;  %s44_s1 = int_to_ptr.hbm [resolvable:$true] %s43_s1 }
   0x8   :  { %s19_s26 = sshll.u32 %s631_s25, 4  ;;  %s56_s30 = sshll.u32 %s709_s3, 4  ;;  %s20_s26 = int_to_ptr.vmem [resolvable:$true] %s19_s26  ;;  %s57_s30 = int_to_ptr.hbm [resolvable:$true] %s56_s30 }
   0x9   :  { %25 = dma.hbm_to_vmem [thread:$0]  %s18_s22, 256, %s20_s26, [#allocation4], %s629_s23, %s629_s23, %s630_s24  }
   0xa   :  { %s632_s5 = smov [#allocation8]   ;;  %s633_s7 = smov [#allocation9]  }
   0xb   :  { %s45_s6 = sshll.u32 %s632_s5, 4  ;;  %s58_s2 = sshll.u32 %s633_s7, 4  ;;  %s46_s6 = int_to_ptr.vmem [resolvable:$true] %s45_s6  ;;  %s59_s2 = int_to_ptr.vmem [resolvable:$true] %s58_s2 }
   0xc   :  { %51 = dma.hbm_to_vmem [thread:$0]  %s44_s1, 4096, %s46_s6, [#allocation7], %s629_s23, %s629_s23, %s630_s24  }
   0xd   :  { %64 = dma.hbm_to_vmem [thread:$0]  %s57_s30, 4096, %s59_s2, [#allocation10], %s629_s23, %s629_s23, %s630_s24  }
   0xe   :  { %620 = dma.done.wait [#allocation4], 256  }
   0xf   :  { %621 = vsyncadd [#allocation4], 4294967040 }
  0x10   :  { %622 = dma.done.wait [#allocation7], 8192  }
  0x11   :  { %623 = vsyncadd [#allocation7], 4294959104 }
  0x12   :  { %624 = dma.done.wait [#allocation10], 4096  }
  0x13   :  { %625 = vsyncadd [#allocation10], 4294963200  ;;  %v104_v0 = vld [vmem:[#allocation6 + $0x78] sm:$0xff]  ;;  %v103_v2 = vld [vmem:[#allocation6 + $0x70] sm:$0xff]  ;;  %s634_s3 = smov [#allocation11]   ;;  %s426_s11 = sshll.u32 %s710_s4, 4  ;;  %s427_s11 = int_to_ptr.hbm [resolvable:$true] %s426_s11 }
  0x14   :  { %v120_v1 = vld [vmem:[#allocation6 + $0xf8] sm:$0xff]  ;;  %121 = vmatpush.xpose.msra.mxu0 %v104_v0  ;;  %v119_v3 = vld [vmem:[#allocation6 + $0xf0] sm:$0xff]  ;;  %v102_v6 = vld [vmem:[#allocation6 + $0x68] sm:$0xff]  ;;  %s424_s8 = sshll.u32 %s634_s3, 4  ;;  %s425_s8 = int_to_ptr.vmem [resolvable:$true] %s424_s8 }
  0x15   :  { %144 = vmatpush.xpose.msra.mxu1 %v120_v1  ;;  %v182_v4 = vld [vmem:[#allocation8 + $0x78] sm:$0xff]  ;;  %v118_v7 = vld [vmem:[#allocation6 + $0xe8] sm:$0xff]  ;;  %v181_v8 = vld [vmem:[#allocation8 + $0x70] sm:$0xff] }
  0x16   :  { %v198_v5 = vld [vmem:[#allocation8 + $0xf8] sm:$0xff]  ;;  %199 = vmatpush.xpose.msra.mxu2 %v182_v4  ;;  %v197_v9 = vld [vmem:[#allocation8 + $0xf0] sm:$0xff]  ;;  %v101_v10 = vld [vmem:[#allocation6 + $0x60] sm:$0xff] }
  0x17   :  { %222 = vmatpush.xpose.msra.mxu3 %v198_v5  ;;  %v117_v11 = vld [vmem:[#allocation6 + $0xe0] sm:$0xff]  ;;  %v180_v12 = vld [vmem:[#allocation8 + $0x68] sm:$0xff]  ;;  %v100_v14 = vld [vmem:[#allocation6 + $0x58] sm:$0xff] }
  0x18   :  { %122 = vmatpush.xpose.msra.mxu0 %v103_v2  ;;  %v196_v13 = vld [vmem:[#allocation8 + $0xe8] sm:$0xff]  ;;  %v116_v15 = vld [vmem:[#allocation6 + $0xd8] sm:$0xff]  ;;  %v179_v16 = vld [vmem:[#allocation8 + $0x60] sm:$0xff] }
  0x19   :  { %145 = vmatpush.xpose.msra.mxu1 %v119_v3  ;;  %v195_v17 = vld [vmem:[#allocation8 + $0xe0] sm:$0xff]  ;;  %v99_v18 = vld [vmem:[#allocation6 + $0x50] sm:$0xff]  ;;  %v178_v20 = vld [vmem:[#allocation8 + $0x58] sm:$0xff] }
  0x1a   :  { %200 = vmatpush.xpose.msra.mxu2 %v181_v8  ;;  %v115_v19 = vld [vmem:[#allocation6 + $0xd0] sm:$0xff]  ;;  %v194_v21 = vld [vmem:[#allocation8 + $0xd8] sm:$0xff]  ;;  %v98_v22 = vld [vmem:[#allocation6 + $0x48] sm:$0xff] }
  0x1b   :  { %223 = vmatpush.xpose.msra.mxu3 %v197_v9  ;;  %v114_v23 = vld [vmem:[#allocation6 + $0xc8] sm:$0xff]  ;;  %v177_v24 = vld [vmem:[#allocation8 + $0x50] sm:$0xff]  ;;  %v97_v26 = vld [vmem:[#allocation6 + $0x40] sm:$0xff] }
  0x1c   :  { %123 = vmatpush.xpose.msra.mxu0 %v102_v6  ;;  %v193_v25 = vld [vmem:[#allocation8 + $0xd0] sm:$0xff]  ;;  %v113_v27 = vld [vmem:[#allocation6 + $0xc0] sm:$0xff]  ;;  %v176_v28 = vld [vmem:[#allocation8 + $0x48] sm:$0xff] }
  0x1d   :  { %146 = vmatpush.xpose.msra.mxu1 %v118_v7  ;;  %v192_v29 = vld [vmem:[#allocation8 + $0xc8] sm:$0xff]  ;;  %v96_v30 = vld [vmem:[#allocation6 + $0x38] sm:$0xff]  ;;  %v175_v32 = vld [vmem:[#allocation8 + $0x40] sm:$0xff] }
  0x1e   :  { %201 = vmatpush.xpose.msra.mxu2 %v180_v12  ;;  %v112_v31 = vld [vmem:[#allocation6 + $0xb8] sm:$0xff]  ;;  %v191_v33 = vld [vmem:[#allocation8 + $0xc0] sm:$0xff]  ;;  %v95_v34 = vld [vmem:[#allocation6 + $0x30] sm:$0xff] }
  0x1f   :  { %224 = vmatpush.xpose.msra.mxu3 %v196_v13  ;;  %v111_v35 = vld [vmem:[#allocation6 + $0xb0] sm:$0xff]  ;;  %v174_v36 = vld [vmem:[#allocation8 + $0x38] sm:$0xff]  ;;  %v94_v38 = vld [vmem:[#allocation6 + $0x28] sm:$0xff] }
  0x20   :  { %124 = vmatpush.xpose.msra.mxu0 %v101_v10  ;;  %v190_v37 = vld [vmem:[#allocation8 + $0xb8] sm:$0xff]  ;;  %v110_v39 = vld [vmem:[#allocation6 + $0xa8] sm:$0xff]  ;;  %v173_v40 = vld [vmem:[#allocation8 + $0x30] sm:$0xff] }
  0x21   :  { %147 = vmatpush.xpose.msra.mxu1 %v117_v11  ;;  %v189_v41 = vld [vmem:[#allocation8 + $0xb0] sm:$0xff]  ;;  %v93_v42 = vld [vmem:[#allocation6 + $0x20] sm:$0xff]  ;;  %v172_v44 = vld [vmem:[#allocation8 + $0x28] sm:$0xff] }
  0x22   :  { %202 = vmatpush.xpose.msra.mxu2 %v179_v16  ;;  %v109_v43 = vld [vmem:[#allocation6 + $0xa0] sm:$0xff]  ;;  %v188_v45 = vld [vmem:[#allocation8 + $0xa8] sm:$0xff]  ;;  %v92_v46 = vld [vmem:[#allocation6 + $0x18] sm:$0xff] }
  0x23   :  { %225 = vmatpush.xpose.msra.mxu3 %v195_v17  ;;  %v108_v47 = vld [vmem:[#allocation6 + $0x98] sm:$0xff]  ;;  %v171_v48 = vld [vmem:[#allocation8 + $0x20] sm:$0xff]  ;;  %v91_v50 = vld [vmem:[#allocation6 + $0x10] sm:$0xff] }
  0x24   :  { %125 = vmatpush.xpose.msra.mxu0 %v100_v14  ;;  %v187_v49 = vld [vmem:[#allocation8 + $0xa0] sm:$0xff]  ;;  %v107_v51 = vld [vmem:[#allocation6 + $0x90] sm:$0xff]  ;;  %v170_v52 = vld [vmem:[#allocation8 + $0x18] sm:$0xff] }
  0x25   :  { %148 = vmatpush.xpose.msra.mxu1 %v116_v15  ;;  %v186_v53 = vld [vmem:[#allocation8 + $0x98] sm:$0xff]  ;;  %v90_v54 = vld [vmem:[#allocation6 + $0x8] sm:$0xff]  ;;  %v169_v56 = vld [vmem:[#allocation8 + $0x10] sm:$0xff] }
  0x26   :  { %203 = vmatpush.xpose.msra.mxu2 %v178_v20  ;;  %v106_v55 = vld [vmem:[#allocation6 + $0x88] sm:$0xff]  ;;  %v185_v57 = vld [vmem:[#allocation8 + $0x90] sm:$0xff]  ;;  %v89_v58 = vld [vmem:[#allocation6] sm:$0xff] }
  0x27   :  { %226 = vmatpush.xpose.msra.mxu3 %v194_v21  ;;  %v105_v59 = vld [vmem:[#allocation6 + $0x80] sm:$0xff]  ;;  %v168_v60 = vld [vmem:[#allocation8 + $0x8] sm:$0xff]  ;;  %v87_v62 = vld [vmem:[#allocation3] sm:$0xff] }
  0x28   :  { %126 = vmatpush.xpose.msra.mxu0 %v99_v18  ;;  %v184_v61 = vld [vmem:[#allocation8 + $0x88] sm:$0xff]  ;;  %v167_v63 = vld [vmem:[#allocation8] sm:$0xff]  ;;  %v88_v1 = vld [vmem:[#allocation3 + $0x8] sm:$0xff] }
  0x29   :  { %149 = vmatpush.xpose.msra.mxu1 %v115_v19  ;;  %v183_v0 = vld [vmem:[#allocation8 + $0x80] sm:$0xff]  ;;  %v346_v2 = vld [vmem:[#allocation9 + $0x78] sm:$0xff]  ;;  %v345_v4 = vld [vmem:[#allocation9 + $0x70] sm:$0xff] }
  0x2a   :  { %204 = vmatpush.xpose.msra.mxu2 %v177_v24  ;;  %v362_v3 = vld [vmem:[#allocation9 + $0xf8] sm:$0xff]  ;;  %v361_v5 = vld [vmem:[#allocation9 + $0xf0] sm:$0xff]  ;;  %v344_v6 = vld [vmem:[#allocation9 + $0x68] sm:$0xff] }
  0x2b   :  { %227 = vmatpush.xpose.msra.mxu3 %v193_v25  ;;  %v360_v7 = vld [vmem:[#allocation9 + $0xe8] sm:$0xff]  ;;  %v343_v8 = vld [vmem:[#allocation9 + $0x60] sm:$0xff]  ;;  %v342_v10 = vld [vmem:[#allocation9 + $0x58] sm:$0xff] }
  0x2c   :  { %127 = vmatpush.xpose.msra.mxu0 %v98_v22  ;;  %v359_v9 = vld [vmem:[#allocation9 + $0xe0] sm:$0xff]  ;;  %v358_v11 = vld [vmem:[#allocation9 + $0xd8] sm:$0xff]  ;;  %v341_v12 = vld [vmem:[#allocation9 + $0x50] sm:$0xff] }
  0x2d   :  { %150 = vmatpush.xpose.msra.mxu1 %v114_v23  ;;  %v357_v13 = vld [vmem:[#allocation9 + $0xd0] sm:$0xff]  ;;  %v340_v14 = vld [vmem:[#allocation9 + $0x48] sm:$0xff]  ;;  %v339_v16 = vld [vmem:[#allocation9 + $0x40] sm:$0xff] }
  0x2e   :  { %205 = vmatpush.xpose.msra.mxu2 %v176_v28  ;;  %v356_v15 = vld [vmem:[#allocation9 + $0xc8] sm:$0xff]  ;;  %v355_v17 = vld [vmem:[#allocation9 + $0xc0] sm:$0xff]  ;;  %v338_v18 = vld [vmem:[#allocation9 + $0x38] sm:$0xff] }
  0x2f   :  { %228 = vmatpush.xpose.msra.mxu3 %v192_v29  ;;  %v354_v19 = vld [vmem:[#allocation9 + $0xb8] sm:$0xff]  ;;  %v337_v20 = vld [vmem:[#allocation9 + $0x30] sm:$0xff]  ;;  %v336_v22 = vld [vmem:[#allocation9 + $0x28] sm:$0xff] }
  0x30   :  { %128 = vmatpush.xpose.msra.mxu0 %v97_v26  ;;  %v353_v21 = vld [vmem:[#allocation9 + $0xb0] sm:$0xff]  ;;  %v352_v23 = vld [vmem:[#allocation9 + $0xa8] sm:$0xff]  ;;  %v335_v24 = vld [vmem:[#allocation9 + $0x20] sm:$0xff] }
  0x31   :  { %151 = vmatpush.xpose.msra.mxu1 %v113_v27  ;;  %v351_v25 = vld [vmem:[#allocation9 + $0xa0] sm:$0xff]  ;;  %v334_v26 = vld [vmem:[#allocation9 + $0x18] sm:$0xff]  ;;  %v333_v28 = vld [vmem:[#allocation9 + $0x10] sm:$0xff] }
  0x32   :  { %206 = vmatpush.xpose.msra.mxu2 %v175_v32  ;;  %v350_v27 = vld [vmem:[#allocation9 + $0x98] sm:$0xff]  ;;  %v349_v29 = vld [vmem:[#allocation9 + $0x90] sm:$0xff] }
  0x33   :  { %229 = vmatpush.xpose.msra.mxu3 %v191_v33 }
  0x34   :  { %129 = vmatpush.xpose.msra.mxu0 %v96_v30 }
  0x35   :  { %152 = vmatpush.xpose.msra.mxu1 %v112_v31 }
  0x36   :  { %207 = vmatpush.xpose.msra.mxu2 %v174_v36  ;;  %v331_v36 = vld [vmem:[#allocation9] sm:$0xff] }
  0x37   :  { %230 = vmatpush.xpose.msra.mxu3 %v190_v37  ;;  %v347_v37 = vld [vmem:[#allocation9 + $0x80] sm:$0xff] }
  0x38   :  { %130 = vmatpush.xpose.msra.mxu0 %v95_v34  ;;  %v332_v34 = vld [vmem:[#allocation9 + $0x8] sm:$0xff] }
  0x39   :  { %153 = vmatpush.xpose.msra.mxu1 %v111_v35  ;;  %v348_v35 = vld [vmem:[#allocation9 + $0x88] sm:$0xff] }
  0x3a   :  { %208 = vmatpush.xpose.msra.mxu2 %v173_v40 }
  0x3b   :  { %231 = vmatpush.xpose.msra.mxu3 %v189_v41 }
  0x3c   :  { %131 = vmatpush.xpose.msra.mxu0 %v94_v38 }
  0x3d   :  { %154 = vmatpush.xpose.msra.mxu1 %v110_v39 }
  0x3e   :  { %209 = vmatpush.xpose.msra.mxu2 %v172_v44 }
  0x3f   :  { %232 = vmatpush.xpose.msra.mxu3 %v188_v45 }
  0x40   :  { %132 = vmatpush.xpose.msra.mxu0 %v93_v42 }
  0x41   :  { %155 = vmatpush.xpose.msra.mxu1 %v109_v43 }
  0x42   :  { %210 = vmatpush.xpose.msra.mxu2 %v171_v48 }
  0x43   :  { %233 = vmatpush.xpose.msra.mxu3 %v187_v49 }
  0x44   :  { %133 = vmatpush.xpose.msra.mxu0 %v92_v46 }
  0x45   :  { %156 = vmatpush.xpose.msra.mxu1 %v108_v47 }
  0x46   :  { %211 = vmatpush.xpose.msra.mxu2 %v170_v52 }
  0x47   :  { %234 = vmatpush.xpose.msra.mxu3 %v186_v53 }
  0x48   :  { %134 = vmatpush.xpose.msra.mxu0 %v91_v50 }
  0x49   :  { %157 = vmatpush.xpose.msra.mxu1 %v107_v51 }
  0x4a   :  { %212 = vmatpush.xpose.msra.mxu2 %v169_v56 }
  0x4b   :  { %235 = vmatpush.xpose.msra.mxu3 %v185_v57 }
  0x4c   :  { %135 = vmatpush.xpose.msra.mxu0 %v90_v54 }
  0x4d   :  { %158 = vmatpush.xpose.msra.mxu1 %v106_v55 }
  0x4e   :  { %213 = vmatpush.xpose.msra.mxu2 %v168_v60 }
  0x4f   :  { %236 = vmatpush.xpose.msra.mxu3 %v184_v61 }
  0x50   :  { %136 = vmatpush.xpose.msra.mxu0 %v89_v58 }
  0x51   :  { %159 = vmatpush.xpose.msra.mxu1 %v105_v59 }
  0x52   :  { %214 = vmatpush.xpose.msra.mxu2 %v167_v63 }
  0x53   :  { %137 = vmatmul.f32.vlgmr.msra.gmra.mxu0 %v87_v62  ;;  %237 = vmatpush.xpose.msra.mxu3 %v183_v0 }
  0x54   :  { %160 = vmatmul.f32.vlgmr.msra.gmra.mxu1 %v87_v62  ;;  %363 = vmatpush.msrb.mxu0 %v346_v2 }
  0x55   :  { %215 = vmatmul.f32.vlgmr.msra.gmra.mxu2 %v87_v62  ;;  %386 = vmatpush.msrb.mxu1 %v362_v3 }
  0x56   :  { %238 = vmatmul.f32.vlgmr.msra.gmra.mxu3 %v87_v62  ;;  %445 = vmatpush.msrb.mxu2 %v346_v2 }
  0x57   :  { %461 = vmatpush.msrb.mxu3 %v362_v3  ;;  %364 = vmatpush.msrb.mxu0 %v345_v4 }
  0x58   :  { %387 = vmatpush.msrb.mxu1 %v361_v5  ;;  %446 = vmatpush.msrb.mxu2 %v345_v4 }
  0x59   :  { %462 = vmatpush.msrb.mxu3 %v361_v5  ;;  %365 = vmatpush.msrb.mxu0 %v344_v6 }
  0x5a   :  { %388 = vmatpush.msrb.mxu1 %v360_v7  ;;  %447 = vmatpush.msrb.mxu2 %v344_v6 }
  0x5b   :  { %140 = vmatmul.f32.gmra.mxu0 %v88_v1  ;;  %463 = vmatpush.msrb.mxu3 %v360_v7 }
  0x5c   :  { %163 = vmatmul.f32.gmra.mxu1 %v88_v1  ;;  %366 = vmatpush.msrb.mxu0 %v343_v8 }
  0x5d   :  { %218 = vmatmul.f32.gmra.mxu2 %v88_v1  ;;  %389 = vmatpush.msrb.mxu1 %v359_v9 }
  0x5e   :  { %241 = vmatmul.f32.gmra.mxu3 %v88_v1  ;;  %448 = vmatpush.msrb.mxu2 %v343_v8 }
  0x5f   :  { %464 = vmatpush.msrb.mxu3 %v359_v9  ;;  %367 = vmatpush.msrb.mxu0 %v342_v10 }
  0x60   :  { %390 = vmatpush.msrb.mxu1 %v358_v11  ;;  %449 = vmatpush.msrb.mxu2 %v342_v10 }
  0x61   :  { %465 = vmatpush.msrb.mxu3 %v358_v11  ;;  %368 = vmatpush.msrb.mxu0 %v341_v12 }
  0x62   :  { %391 = vmatpush.msrb.mxu1 %v357_v13  ;;  %450 = vmatpush.msrb.mxu2 %v341_v12 }
  0x63   :  { %466 = vmatpush.msrb.mxu3 %v357_v13  ;;  %369 = vmatpush.msrb.mxu0 %v340_v14 }
  0x64   :  { %392 = vmatpush.msrb.mxu1 %v356_v15  ;;  %451 = vmatpush.msrb.mxu2 %v340_v14 }
  0x65   :  { %467 = vmatpush.msrb.mxu3 %v356_v15  ;;  %370 = vmatpush.msrb.mxu0 %v339_v16 }
  0x66   :  { %393 = vmatpush.msrb.mxu1 %v355_v17  ;;  %452 = vmatpush.msrb.mxu2 %v339_v16 }
  0x67   :  { %468 = vmatpush.msrb.mxu3 %v355_v17  ;;  %371 = vmatpush.msrb.mxu0 %v338_v18 }
  0x68   :  { %394 = vmatpush.msrb.mxu1 %v354_v19  ;;  %453 = vmatpush.msrb.mxu2 %v338_v18 }
  0x69   :  { %469 = vmatpush.msrb.mxu3 %v354_v19  ;;  %372 = vmatpush.msrb.mxu0 %v337_v20 }
  0x6a   :  { %395 = vmatpush.msrb.mxu1 %v353_v21  ;;  %454 = vmatpush.msrb.mxu2 %v337_v20 }
  0x6b   :  { %470 = vmatpush.msrb.mxu3 %v353_v21  ;;  %373 = vmatpush.msrb.mxu0 %v336_v22 }
  0x6c   :  { %396 = vmatpush.msrb.mxu1 %v352_v23  ;;  %455 = vmatpush.msrb.mxu2 %v336_v22 }
  0x6d   :  { %471 = vmatpush.msrb.mxu3 %v352_v23  ;;  %374 = vmatpush.msrb.mxu0 %v335_v24 }
  0x6e   :  { %397 = vmatpush.msrb.mxu1 %v351_v25  ;;  %456 = vmatpush.msrb.mxu2 %v335_v24 }
  0x6f   :  { %472 = vmatpush.msrb.mxu3 %v351_v25  ;;  %375 = vmatpush.msrb.mxu0 %v334_v26 }
  0x70   :  { %398 = vmatpush.msrb.mxu1 %v350_v27  ;;  %457 = vmatpush.msrb.mxu2 %v334_v26 }
  0x71   :  { %473 = vmatpush.msrb.mxu3 %v350_v27  ;;  %376 = vmatpush.msrb.mxu0 %v333_v28 }
  0x72   :  { %399 = vmatpush.msrb.mxu1 %v349_v29  ;;  %458 = vmatpush.msrb.mxu2 %v333_v28 }
  0x73   :  { %474 = vmatpush.msrb.mxu3 %v349_v29  ;;  %377 = vmatpush.msrb.mxu0 %v332_v34 }
  0x74   :  { %400 = vmatpush.msrb.mxu1 %v348_v35  ;;  %459 = vmatpush.msrb.mxu2 %v332_v34 }
  0x75   :  { %475 = vmatpush.msrb.mxu3 %v348_v35  ;;  %378 = vmatpush.msrb.mxu0 %v331_v36 }
  0x76   :  { %401 = vmatpush.msrb.mxu1 %v347_v37  ;;  %460 = vmatpush.msrb.mxu2 %v331_v36 }
  0x77   :  { %476 = vmatpush.msrb.mxu3 %v347_v37 }
  0xd0   :  { %v684_v30 = vpop.f32.mrf.mxu0 }
  0xd1   :  { %v686_v31 = vpop.f32.mrf.mxu1  ;;  %v441_v32 = vmul.f32 -1.442695, %v684_v30 }
  0xd2   :  { %v442_v33 = vmul.f32 -1.442695, %v686_v31 }
  0xd3   :  { %484 = vpow2.f32 %v441_v32 }
  0xd4   :  { %486 = vpow2.f32 %v442_v33 }
  0xd8   :  { %v690_v38 = vpop.f32.mrf.mxu0  ;;  %v216_v2 = vpop.f32.mrf.mxu2 }
  0xd9   :  { %v692_v39 = vpop.f32.mrf.mxu1  ;;  %v485_v40 = vpop.eup %484  ;;  %v443_v41 = vmul.f32 -1.442695, %v690_v38 }
  0xda   :  { %v487_v42 = vpop.eup %486  ;;  %v257_v43 = vadd.f32 1.0, %v485_v40  ;;  %v444_v44 = vmul.f32 -1.442695, %v692_v39  ;;  %v239_v12 = vpop.f32.mrf.mxu3 }
  0xdb   :  { %v258_v45 = vadd.f32 1.0, %v487_v42  ;;  %488 = vpow2.f32 %v443_v41 }
  0xdc   :  { %490 = vrcp.f32 %v257_v43  ;;  %v270_v55 = vand.u32 2147483647, %v257_v43  ;;  %v272_v56 = vand.u32 2147483648, %v257_v43  ;;  %vm266_vm2 = vweird.f32 %v257_v43 }
  0xdd   :  { %492 = vrcp.f32 %v258_v45  ;;  %v287_v59 = vand.u32 2147483648, %v258_v45  ;;  %v285_v61 = vand.u32 2147483647, %v258_v45  ;;  %vm281_vm4 = vweird.f32 %v258_v45 }
  0xde   :  { %494 = vpow2.f32 %v444_v44  ;;  %v273_v0 = vor.u32 1.1754944e-38, %v272_v56  ;;  %vm271_vm5 = vcmp.eq.f32.partialorder %v270_v55, 8.507059e+37 }
  0xdf   :  { %v288_v4 = vor.u32 1.1754944e-38, %v287_v59  ;;  %vm286_vm7 = vcmp.eq.f32.partialorder %v285_v61, 8.507059e+37 }
  0xe0   :  { %v219_v29 = vpop.f32.mrf.mxu2 }
  0xe1   :  { %v489_v46 = vpop.eup %488 }
  0xe2   :  { %v491_v47 = vpop.eup %490  ;;  %v259_v48 = vadd.f32 1.0, %v489_v46  ;;  %v242_v35 = vpop.f32.mrf.mxu3 }
  0xe3   :  { %v493_v49 = vpop.eup %492  ;;  %v262_v50 = vmul.f32 %v491_v47, %v257_v43  ;;  %vm267_vm0 = vweird.f32 %v491_v47 }
  0xe4   :  { %v495_v51 = vpop.eup %494  ;;  %v277_v52 = vmul.f32 %v493_v49, %v258_v45  ;;  %496 = vrcp.f32 %v259_v48  ;;  %vm282_vm1 = vweird.f32 %v493_v49  ;;  %vm268_vm3 = vmor %vm266_vm2, %vm267_vm0  ;;  %v302_v14 = vand.u32 2147483648, %v259_v48 }
  0xe5   :  { %v263_v53 = vsub.f32 1.0, %v262_v50  ;;  %v260_v54 = vadd.f32 1.0, %v495_v51  ;;  %vm283_vm6 = vmor %vm281_vm4, %vm282_vm1  ;;  %v300_v17 = vand.u32 2147483647, %v259_v48  ;;  %vm296_vm9 = vweird.f32 %v259_v48 }
  0xe6   :  { %v278_v57 = vsub.f32 1.0, %v277_v52  ;;  %v303_v23 = vor.u32 1.1754944e-38, %v302_v14 }
  0xe7   :  { %v264_v58 = vmul.f32 %v491_v47, %v263_v53  ;;  %498 = vrcp.f32 %v260_v54  ;;  %v317_v22 = vand.u32 2147483648, %v260_v54  ;;  %v315_v25 = vand.u32 2147483647, %v260_v54 }
  0xe8   :  { %v279_v60 = vmul.f32 %v493_v49, %v278_v57  ;;  %vm301_vm12 = vcmp.eq.f32.partialorder %v300_v17, 8.507059e+37  ;;  %vm311_vm13 = vweird.f32 %v260_v54 }
  0xe9   :  { %v265_v62 = vadd.f32 %v491_v47, %v264_v58  ;;  %vm316_vm15 = vcmp.eq.f32.partialorder %v315_v25, 8.507059e+37 }
  0xea   :  { %v497_v63 = vpop.eup %496  ;;  %v280_v1 = vadd.f32 %v493_v49, %v279_v60 }
  0xeb   :  { %v269_v3 = vsel %vm268_vm3, %v491_v47, %v265_v62  ;;  %v292_v5 = vmul.f32 %v497_v63, %v259_v48  ;;  %vm297_vm8 = vweird.f32 %v497_v63 }
  0xec   :  { %v274_v6 = vsel %vm271_vm5, %v273_v0, %v269_v3  ;;  %v284_v7 = vsel %vm283_vm6, %v493_v49, %v280_v1  ;;  %vm298_vm10 = vmor %vm296_vm9, %vm297_vm8 }
  0xed   :  { %v499_v8 = vpop.eup %498  ;;  %v321_v9 = vmul.f32 %v274_v6, %v684_v30  ;;  %v289_v10 = vsel %vm286_vm7, %v288_v4, %v284_v7  ;;  %v293_v11 = vsub.f32 1.0, %v292_v5 }
  0xee   :  { %v322_v13 = vmul.f32 %v289_v10, %v686_v31  ;;  %v307_v15 = vmul.f32 %v499_v8, %v260_v54  ;;  %vm312_vm11 = vweird.f32 %v499_v8  ;;  %v318_v31 = vor.u32 1.1754944e-38, %v317_v22 }
  0xef   :  { %v294_v16 = vmul.f32 %v497_v63, %v293_v11  ;;  %v325_v18 = vmul.f32 %v321_v9, %v216_v2  ;;  %vm313_vm14 = vmor %vm311_vm13, %vm312_vm11 }
  0xf0   :  { %v308_v19 = vsub.f32 1.0, %v307_v15  ;;  %v326_v20 = vmul.f32 %v322_v13, %v239_v12 }
  0xf1   :  { %v295_v21 = vadd.f32 %v497_v63, %v294_v16  ;;  %379 = vmatmul.f32.vlgmr.msrb.gmra.mxu0 %v325_v18 }
  0xf2   :  { %v309_v24 = vmul.f32 %v499_v8, %v308_v19  ;;  %402 = vmatmul.f32.vlgmr.msrb.gmra.mxu1 %v326_v20 }
  0xf3   :  { %v299_v26 = vsel %vm298_vm10, %v497_v63, %v295_v21 }
  0xf4   :  { %v304_v27 = vsel %vm301_vm12, %v303_v23, %v299_v26  ;;  %v310_v28 = vadd.f32 %v499_v8, %v309_v24 }
  0xf5   :  { %v323_v30 = vmul.f32 %v304_v27, %v690_v38 }
  0xf6   :  { %v314_v32 = vsel %vm313_vm14, %v499_v8, %v310_v28 }
  0xf7   :  { %v319_v33 = vsel %vm316_vm15, %v318_v31, %v314_v32  ;;  %v327_v34 = vmul.f32 %v323_v30, %v219_v29 }
  0xf8   :  { %v324_v36 = vmul.f32 %v319_v33, %v692_v39 }
  0xf9   :  { %382 = vmatmul.f32.vlgmr.msrb.gmra.mxu2 %v327_v34 }
  0xfa   :  { %v328_v37 = vmul.f32 %v324_v36, %v242_v35 }
  0xfc   :  { %405 = vmatmul.f32.vlgmr.msrb.gmra.mxu3 %v328_v37 }
 0x16e   :  { %v380_v40 = vpop.f32.mrf.mxu0 }
 0x16f   :  { %v403_v41 = vpop.f32.mrf.mxu1 }
 0x170   :  { %v404_v42 = vadd.f32 %v403_v41, %v380_v40 }
 0x172   :  { %418 = vst [vmem:[#allocation11] sm:$0xff] %v404_v42 }
 0x17c   :  { %v383_v43 = vpop.f32.mrf.mxu2 }
 0x17f   :  { %v406_v38 = vpop.f32.mrf.mxu3 }
 0x180   :  { %v407_v44 = vadd.f32 %v406_v38, %v383_v43 }
 0x182   :  { %419 = vst [vmem:[#allocation11 + $0x8] sm:$0xff] %v407_v44 }
 0x183   :  { %432 = dma.vmem_to_hbm [thread:$0]  %s425_s8, 256, %s427_s11, [#allocation5], %s629_s23, %s629_s23, %s630_s24  }
 0x184   :  { %626 = dma.done.wait [#allocation5], 256  }
 0x185   :  { %627 = vsyncadd [#allocation5], 4294967040 }
 0x186   :  { %437 = vsyncpa [#allocation4], 1 }
 0x187   :  { %438 = vsyncpa [#allocation7], 1 }
 0x188   :  { %439 = vsyncpa [#allocation10], 1 }
 0x189   :  { %440 = vsyncpa [#allocation5], 1 }

</bundles_post_ra>
